<compile_context>
chip_gen: v6e
topology: v6e:2x2x1
jax: 0.10.0
libtpu: 0.0.40
codegen_flags: <defaults>
</compile_context>

<pallas_src>
import functools

import jax
import jax.numpy as jnp
from jax.experimental import pallas as pl
from jax.experimental.pallas import tpu as pltpu


# ---- tiling / VMEM sizing knobs --------------------------------------------
_LIVE_VMEM_BUDGET = 20 * 1024 * 1024   # target live VMEM bytes per grid step
_VMEM_LIMIT_CAP = 48 * 1024 * 1024     # stay well under v7x's 64 MiB physical VMEM
_MAX_TILE_MULTI = 128 * 1024           # spatial elements per step, C > 1
_MAX_TILE_BINARY = 256 * 1024          # spatial elements per step, C == 1
_TEMP_F32_ARRAYS = 6                   # estimate of live (C, tile) f32 temporaries
_TARGET_PARALLEL = 2                   # B * n_chunks >= 2 keeps both v7x TCs busy


def _cdiv(a, b):
    return -(-a // b)


def _round_up(a, m):
    return _cdiv(a, m) * m


def _sum_spatial(a):
    """Reduce every axis except axis 0, one axis at a time (innermost first)."""
    while a.ndim > 1:
        a = jnp.sum(a, axis=a.ndim - 1)
    return a


def _tversky_stats_kernel(logits_ref, labels_ref, out_ref, acc_ref, *,
                          binary, n_inner, block0, total0, need_mask):
    """Per-(batch, chunk) Tversky statistics for one spatial block.

    logits_ref: (1, C_in) + spatial    caller dtype (f32 / bf16)
    labels_ref: (1, 1)   + spatial     any integer dtype (255 = ignore)
    out_ref:    (1, 1, 3, c_out) f32   rows = [inter | sum_p | sum_t]
    acc_ref:    (3, c_out) f32 VMEM accumulator (reset at inner step 0)

    `spatial` is either (tile,) (flat / ragged path) or (rows, 128)
    (lane-aligned path). The innermost grid axis walks `block0`-sized slabs of
    spatial axis 0, which has `total0` valid entries in total.
    """
    t_idx = pl.program_id(2)

    @pl.when(t_idx == 0)
    def _():
        acc_ref[...] = jnp.zeros_like(acc_ref)

    x = logits_ref[0].astype(jnp.float32)        # (C_in,) + spatial
    lab = labels_ref[0].astype(jnp.int32)        # (1,)   + spatial
    spatial = x.shape[1:]

    valid_b = None
    valid_f = None
    if need_mask:
        # Global position along the blocked spatial axis; anything >= total0 is
        # the ragged tail of HW (stale VMEM / partial DMA) and contributes 0.
        s_idx = pl.program_id(1)
        pos = jax.lax.broadcasted_iota(jnp.int32, (1,) + spatial, 1)
        gpos = (s_idx * n_inner + t_idx) * block0 + pos
        valid_b = gpos < total0
        valid_f = valid_b.astype(jnp.float32)
        # Clamp garbage logits to a finite value BEFORE exp so they cannot turn
        # into Inf/NaN that the multiply-by-zero mask below could not cancel.
        x = jnp.where(valid_b, x, 0.0)

    if binary:
        # Sigmoid branch: classes are [pos, neg]; the "neg" channel is built in
        # VMEM instead of materializing a zero channel in HBM.
        p_pos = pl.reciprocal(1.0 + jnp.exp(-x))           # (1,) + spatial
        if need_mask:
            p_pos = p_pos * valid_f
            p_neg = valid_f - p_pos
        else:
            p_neg = 1.0 - p_pos
        rows = jax.lax.broadcasted_iota(jnp.int32, (2,) + spatial, 0)
        p = jnp.where(rows == 0, p_pos, p_neg)             # (2,) + spatial
        t_b = jnp.where(rows == 0, lab == 1, lab == 0)
    else:
        # Stable softmax over the channel axis (leading dim -> cheap VPU
        # elementwise reductions in the lane-aligned layout).
        m = jnp.max(x, axis=0, keepdims=True)
        e = jnp.exp(x - m)
        inv = pl.reciprocal(jnp.sum(e, axis=0, keepdims=True))
        if need_mask:
            inv = inv * valid_f                            # fuse pad mask into norm
        p = e * inv                                        # (C,) + spatial
        cls = jax.lax.broadcasted_iota(jnp.int32, x.shape, 0)
        t_b = cls == lab                                   # 255-ignore -> all False

    if need_mask:
        t_b = jnp.logical_and(t_b, valid_b)
    t = t_b.astype(jnp.float32)

    acc_ref[0, :] += _sum_spatial(p * t)                   # intersection
    acc_ref[1, :] += _sum_spatial(p)                       # sum of probabilities
    acc_ref[2, :] += _sum_spatial(t)                       # sum of one-hot targets

    @pl.when(t_idx == pl.num_programs(2) - 1)
    def _():
        out_ref[0, 0] = acc_ref[...]


def _per_elem_bytes(c_in, c_out, logit_bytes, label_bytes):
    """Approx live VMEM bytes per spatial element: double-buffered inputs plus
    the f32 temporaries the kernel body materializes."""
    return (2 * (c_in * logit_bytes + label_bytes)
            + _TEMP_F32_ARRAYS * max(c_in, c_out) * 4
            + 6 * 4)  # a handful of (1, spatial) f32 temps (max, denom, mask, ...)


@functools.partial(jax.jit, static_argnames=("no_back",))
def focal_tversky_loss(logits, targets, *, alpha=0.7, beta=0.3,
                       gamma=4.0 / 3.0, eps=1e-7, no_back=False):
    """Matches FocalTverskyLoss.forward(inputs=logits, targets=targets)."""
    B, C, H, W = logits.shape
    HW = H * W
    binary = C == 1
    c_out = 2 if binary else C

    logit_bytes = jnp.dtype(logits.dtype).itemsize
    label_bytes = jnp.dtype(targets.dtype).itemsize
    per_elem = _per_elem_bytes(C, c_out, logit_bytes, label_bytes)
    cap = _MAX_TILE_BINARY if binary else _MAX_TILE_MULTI
    budget_elems = max(128, min(_LIVE_VMEM_BUDGET // per_elem, cap))

    logits_r = logits.reshape(B, C, HW)        # keep caller dtype (bf16 stays bf16)
    labels_r = targets.reshape(B, 1, HW)       # keep caller int dtype (uint8 OK)

    if HW % 128 == 0:
        # Lane-aligned path: free metadata reshape to (rows, 128) so spatial rows
        # fill all 8 sublanes of every vreg (no wasted EUP/VPU work for small C).
        n_rows = HW // 128
        rows_budget = max(32, (budget_elems // 128) // 32 * 32)  # 32: safe for u8/bf16
        block0 = n_rows if n_rows <= rows_budget else rows_budget
        total0 = n_rows
        logits_r = logits_r.reshape(B, C, n_rows, 128)
        labels_r = labels_r.reshape(B, 1, n_rows, 128)
        blk_logits = (1, C, block0, 128)
        blk_labels = (1, 1, block0, 128)
        trailing = (0,)                      # extra block index for the lane dim
        block_elems = block0 * 128
    else:
        # Ragged HW: flat lane layout, NO jnp.pad of logits/labels -- the tail of
        # the last block is masked in-kernel instead.
        tile = max(128, (min(budget_elems, _round_up(HW, 128)) // 128) * 128)
        block0 = tile
        total0 = HW
        blk_logits = (1, C, tile)
        blk_labels = (1, 1, tile)
        trailing = ()
        block_elems = tile

    n_blocks = _cdiv(total0, block0)

    # Split the tile axis into `n_split` parallel chunks (a divisor of n_blocks,
    # so no chunk ever indexes past the array) to keep both v7x TensorCores busy
    # even for B == 1. The innermost axis is the reduction carried in scratch.
    desired = min(n_blocks, max(1, _cdiv(_TARGET_PARALLEL, B)))
    n_split = n_blocks
    for d in range(desired, n_blocks + 1):
        if n_blocks % d == 0:
            n_split = d
            break
    n_inner = n_blocks // n_split
    need_mask = (n_blocks * block0) != total0

    logits_map = lambda b, s, t: (b, 0, s * n_inner + t) + trailing
    labels_map = lambda b, s, t: (b, 0, s * n_inner + t) + trailing

    kernel = functools.partial(
        _tversky_stats_kernel, binary=binary, n_inner=n_inner,
        block0=block0, total0=total0, need_mask=need_mask)

    live_est = per_elem * block_elems
    vmem_limit = int(min(_VMEM_LIMIT_CAP, max(32 * 1024 * 1024, 2 * live_est)))

    partial = pl.pallas_call(
        kernel,
        out_shape=jax.ShapeDtypeStruct((B, n_split, 3, c_out), jnp.float32),
        grid_spec=pltpu.PrefetchScalarGridSpec(
            num_scalar_prefetch=0,
            grid=(B, n_split, n_inner),
            in_specs=[
                pl.BlockSpec(blk_logits, logits_map),
                pl.BlockSpec(blk_labels, labels_map),
            ],
            out_specs=pl.BlockSpec((1, 1, 3, c_out), lambda b, s, t: (b, s, 0, 0)),
            scratch_shapes=[pltpu.VMEM((3, c_out), jnp.float32)],
        ),
        compiler_params=pltpu.CompilerParams(
            dimension_semantics=("parallel", "parallel", "arbitrary"),
            vmem_limit_bytes=vmem_limit,
        ),
    )(logits_r, labels_r)

    stats = jnp.sum(partial, axis=(0, 1))          # (3, c_out) over batch/chunk
    inter = stats[0]
    fps = stats[1] - inter                         # sum(p) - sum(p*t) == sum(p*(1-t))
    fns = stats[2] - inter                         # sum(t) - sum(p*t) == sum((1-p)*t)
    tversky = inter / (inter + alpha * fps + beta * fns + eps)
    if no_back:
        tversky = tversky[1:]
    return jnp.mean((1.0 - tversky) ** gamma)


class FocalTverskyLoss:
    """Pallas-backed equivalent of the PyTorch FocalTverskyLoss module."""

    def __init__(self, num_classes=1, no_back=False):
        # num_classes is unused by forward in the reference (derived from logits).
        self.num_classes = num_classes
        self.no_back = no_back

    def __call__(self, inputs, targets):
        return focal_tversky_loss(inputs, targets, no_back=self.no_back)


def _reference_loss(logits, targets, alpha=0.7, beta=0.3, gamma=4.0 / 3.0,
                    eps=1e-7, no_back=False):
    """Pure-JAX reference mirroring the PyTorch tversky_loss()."""
    B, C, H, W = logits.shape
    targets = targets.reshape(B, H, W).astype(jnp.int32)
    if C == 1:
        pos = jax.nn.sigmoid(logits)
        probas = jnp.concatenate([pos, 1.0 - pos], axis=1)
        t1 = (targets == 1).astype(jnp.float32)[:, None]
        t0 = (targets == 0).astype(jnp.float32)[:, None]
        true_1h = jnp.concatenate([t1, t0], axis=1)
    else:
        probas = jax.nn.softmax(logits.astype(jnp.float32), axis=1)
        true_1h = (targets[:, None, :, :] ==
                   jnp.arange(C)[None, :, None, None]).astype(jnp.float32)
    dims = (0, 2, 3)
    inter = jnp.sum(probas * true_1h, dims)
    fps = jnp.sum(probas * (1.0 - true_1h), dims)
    fns = jnp.sum((1.0 - probas) * true_1h, dims)
    tv = inter / (inter + alpha * fps + beta * fns + eps)
    if no_back:
        tv = tv[1:]
    return jnp.mean((1.0 - tv) ** gamma)


if __name__ == "__main__":
    key = jax.random.PRNGKey(0)
    k1, k2, k3, k4, k5, k6, k7 = jax.random.split(key, 7)

    # --- multi-class path (B=2, C=4, 16x16), lane-aligned HW, uint8 labels ---
    B, C, H, W = 2, 4, 16, 16
    logits = jax.random.normal(k1, (B, C, H, W), dtype=jnp.float32)
    labels = jax.random.randint(k2, (B, H, W), 0, C, dtype=jnp.int32)
    labels = jnp.where(jax.random.bernoulli(k3, 0.1, (B, H, W)), 255, labels)
    labels_u8 = labels.astype(jnp.uint8)          # 1-byte labels: less HBM traffic

    loss = jax.block_until_ready(FocalTverskyLoss(num_classes=C)(logits, labels_u8))
    ref = _reference_loss(logits, labels)
    assert jnp.allclose(loss, ref, rtol=1e-5, atol=1e-6), (loss, ref)

    # --- binary (sigmoid) path, C == 1, int32 labels ---
    logits1 = jax.random.normal(k1, (B, 1, H, W), dtype=jnp.float32)
    labels1 = jax.random.randint(k2, (B, H, W), 0, 2, dtype=jnp.int32)
    labels1 = jnp.where(jax.random.bernoulli(k4, 0.1, (B, H, W)), 255, labels1)
    loss1 = jax.block_until_ready(FocalTverskyLoss(num_classes=1)(logits1, labels1))
    ref1 = _reference_loss(logits1, labels1)
    assert jnp.allclose(loss1, ref1, rtol=1e-5, atol=1e-6), (loss1, ref1)

    # --- ragged spatial size (13x13, HW % 128 != 0): in-kernel tail masking ---
    H2, W2, C2 = 13, 13, 3
    logits2 = jax.random.normal(k5, (B, C2, H2, W2), dtype=jnp.float32)
    labels2 = jax.random.randint(k2, (B, H2, W2), 0, C2, dtype=jnp.int32)
    labels2 = jnp.where(jax.random.bernoulli(k3, 0.1, (B, H2, W2)), 255, labels2)
    loss2 = jax.block_until_ready(
        FocalTverskyLoss(num_classes=C2, no_back=True)(logits2, labels2))
    ref2 = _reference_loss(logits2, labels2, no_back=True)
    assert jnp.allclose(loss2, ref2, rtol=1e-5, atol=1e-6), (loss2, ref2)

    # --- medium lane-aligned case (576x576): multi-tile accumulation + row mask ---
    H3, W3, C3 = 576, 576, 4
    logits3 = jax.random.normal(k6, (B, C3, H3, W3), dtype=jnp.float32)
    labels3 = jax.random.randint(k7, (B, H3, W3), 0, C3, dtype=jnp.int32)
    labels3 = jnp.where(jax.random.bernoulli(k3, 0.05, (B, H3, W3)), 255, labels3)
    labels3_u8 = labels3.astype(jnp.uint8)
    loss3 = jax.block_until_ready(FocalTverskyLoss(num_classes=C3)(logits3, labels3_u8))
    ref3 = _reference_loss(logits3, labels3)
    assert jnp.allclose(loss3, ref3, rtol=1e-4, atol=1e-6), (loss3, ref3)

    # --- same data, B=1: exercises the multi-chunk ("parallel") tile split ---
    loss3b = jax.block_until_ready(
        FocalTverskyLoss(num_classes=C3)(logits3[:1], labels3_u8[:1]))
    ref3b = _reference_loss(logits3[:1], labels3[:1])
    assert jnp.allclose(loss3b, ref3b, rtol=1e-4, atol=1e-6), (loss3b, ref3b)

    print("KERNEL_OK")
</pallas_src>

<mosaic_0001>
module attributes {stable_mosaic.version = 11 : i64} {
  func.func @_tversky_stats_kernel(%arg0: i32, %arg1: i32, %arg2: i32, %arg3: memref<1x4x2x128xf32, #tpu.memory_space<vmem>>, %arg4: memref<1x1x2x128xi8, #tpu.memory_space<vmem>>, %arg5: memref<1x1x3x4xf32, #tpu.memory_space<vmem>>, %arg6: memref<3x4xf32, #tpu.memory_space<vmem>>) attributes {dimension_semantics = [#tpu.dimension_semantics<parallel>, #tpu.dimension_semantics<parallel>, #tpu.dimension_semantics<arbitrary>], iteration_bounds = array<i64: 2, 1, 1>, scalar_prefetch = 0 : i64, scratch_operands = 1 : i64, tpu.core_type = #tpu.core_type<tc>, window_params = [{transform_indices = @transform_0, window_bounds = array<i64: 1, 4, 2, 128>}, {transform_indices = @transform_1, window_bounds = array<i64: 1, 1, 2, 128>}, {transform_indices = @transform_2, window_bounds = array<i64: 1, 1, 3, 4>}]} {
    %c0_i32 = arith.constant 0 : i32
    %0 = arith.cmpi eq, %arg2, %c0_i32 : i32
    %1 = arith.extui %0 : i1 to i32
    %c0_i32_0 = arith.constant 0 : i32
    %2 = arith.cmpi ne, %1, %c0_i32_0 : i32
    scf.if %2 {
      %cst_27 = arith.constant 0.000000e+00 : f32
      %51 = vector.broadcast %cst_27 : f32 to vector<3x4xf32>
      %c0_28 = arith.constant 0 : index
      %c0_29 = arith.constant 0 : index
      %52 = vector.load %arg6[%c0_28, %c0_29] : memref<3x4xf32, #tpu.memory_space<vmem>>, vector<3x4xf32>
      tpu.vector_store %arg6[%c0_28, %c0_29], %51 {strides = array<i32>} : memref<3x4xf32, #tpu.memory_space<vmem>>, vector<3x4xf32>,
    } else {
    }
    %c0 = arith.constant 0 : index
    %c0_1 = arith.constant 0 : index
    %c0_2 = arith.constant 0 : index
    %c0_3 = arith.constant 0 : index
    %3 = vector.load %arg3[%c0, %c0_1, %c0_2, %c0_3] : memref<1x4x2x128xf32, #tpu.memory_space<vmem>>, vector<1x4x2x128xf32>
    %4 = vector.shape_cast %3 : vector<1x4x2x128xf32> to vector<4x2x128xf32>
    %c0_4 = arith.constant 0 : index
    %c0_5 = arith.constant 0 : index
    %c0_6 = arith.constant 0 : index
    %c0_7 = arith.constant 0 : index
    %5 = vector.load %arg4[%c0_4, %c0_5, %c0_6, %c0_7] : memref<1x1x2x128xi8, #tpu.memory_space<vmem>>, vector<1x1x2x128xi8>
    %6 = vector.shape_cast %5 : vector<1x1x2x128xi8> to vector<1x2x128xi8>
    %7 = arith.extui %6 : vector<1x2x128xi8> to vector<1x2x128xi32>
    %cst = arith.constant dense<0xFF800000> : vector<2x128xf32>
    %8 = vector.multi_reduction <maximumf>, %4, %cst [0] : vector<4x2x128xf32> to vector<2x128xf32>
    %9 = vector.shape_cast %8 : vector<2x128xf32> to vector<1x2x128xf32>
    %10 = vector.broadcast %9 : vector<1x2x128xf32> to vector<4x2x128xf32>
    %11 = arith.subf %4, %10 : vector<4x2x128xf32>
    %12 = math.exp %11 : vector<4x2x128xf32>
    %cst_8 = arith.constant dense<0.000000e+00> : vector<2x128xf32>
    %13 = vector.multi_reduction <add>, %12, %cst_8 [0] : vector<4x2x128xf32> to vector<2x128xf32>
    %14 = vector.shape_cast %13 : vector<2x128xf32> to vector<1x2x128xf32>
    %15 = tpu.reciprocal %14 : vector<1x2x128xf32> -> vector<1x2x128xf32>
    %16 = vector.broadcast %15 : vector<1x2x128xf32> to vector<4x2x128xf32>
    %17 = arith.mulf %12, %16 : vector<4x2x128xf32>
    %18 = tpu.iota {dimensions = array<i32: 0>} : vector<4x2x128xi32>
    %19 = vector.broadcast %7 : vector<1x2x128xi32> to vector<4x2x128xi32>
    %20 = arith.cmpi eq, %18, %19 : vector<4x2x128xi32>
    %21 = arith.extui %20 : vector<4x2x128xi1> to vector<4x2x128xi32>
    %22 = arith.sitofp %21 : vector<4x2x128xi32> to vector<4x2x128xf32>
    %c0_9 = arith.constant 0 : index
    %c0_10 = arith.constant 0 : index
    %23 = vector.load %arg6[%c0_9, %c0_10] : memref<3x4xf32, #tpu.memory_space<vmem>>, vector<1x4xf32>
    %24 = vector.shape_cast %23 : vector<1x4xf32> to vector<4xf32>
    %25 = arith.mulf %17, %22 : vector<4x2x128xf32>
    %cst_11 = arith.constant dense<0.000000e+00> : vector<4x2xf32>
    %26 = vector.multi_reduction <add>, %25, %cst_11 [2] : vector<4x2x128xf32> to vector<4x2xf32>
    %cst_12 = arith.constant dense<0.000000e+00> : vector<4xf32>
    %27 = vector.multi_reduction <add>, %26, %cst_12 [1] : vector<4x2xf32> to vector<4xf32>
    %28 = arith.addf %24, %27 : vector<4xf32>
    %c0_13 = arith.constant 0 : index
    %c0_14 = arith.constant 0 : index
    %29 = vector.load %arg6[%c0_13, %c0_14] : memref<3x4xf32, #tpu.memory_space<vmem>>, vector<1x4xf32>
    %30 = vector.shape_cast %29 : vector<1x4xf32> to vector<4xf32>
    %31 = vector.shape_cast %28 : vector<4xf32> to vector<1x4xf32>
    tpu.vector_store %arg6[%c0_13, %c0_14], %31 {strides = array<i32>} : memref<3x4xf32, #tpu.memory_space<vmem>>, vector<1x4xf32>,
    %c1 = arith.constant 1 : index
    %c0_15 = arith.constant 0 : index
    %32 = vector.load %arg6[%c1, %c0_15] : memref<3x4xf32, #tpu.memory_space<vmem>>, vector<1x4xf32>
    %33 = vector.shape_cast %32 : vector<1x4xf32> to vector<4xf32>
    %cst_16 = arith.constant dense<0.000000e+00> : vector<4x2xf32>
    %34 = vector.multi_reduction <add>, %17, %cst_16 [2] : vector<4x2x128xf32> to vector<4x2xf32>
    %cst_17 = arith.constant dense<0.000000e+00> : vector<4xf32>
    %35 = vector.multi_reduction <add>, %34, %cst_17 [1] : vector<4x2xf32> to vector<4xf32>
    %36 = arith.addf %33, %35 : vector<4xf32>
    %c1_18 = arith.constant 1 : index
    %c0_19 = arith.constant 0 : index
    %37 = vector.load %arg6[%c1_18, %c0_19] : memref<3x4xf32, #tpu.memory_space<vmem>>, vector<1x4xf32>
    %38 = vector.shape_cast %37 : vector<1x4xf32> to vector<4xf32>
    %39 = vector.shape_cast %36 : vector<4xf32> to vector<1x4xf32>
    tpu.vector_store %arg6[%c1_18, %c0_19], %39 {strides = array<i32>} : memref<3x4xf32, #tpu.memory_space<vmem>>, vector<1x4xf32>,
    %c2 = arith.constant 2 : index
    %c0_20 = arith.constant 0 : index
    %40 = vector.load %arg6[%c2, %c0_20] : memref<3x4xf32, #tpu.memory_space<vmem>>, vector<1x4xf32>
    %41 = vector.shape_cast %40 : vector<1x4xf32> to vector<4xf32>
    %cst_21 = arith.constant dense<0.000000e+00> : vector<4x2xf32>
    %42 = vector.multi_reduction <add>, %22, %cst_21 [2] : vector<4x2x128xf32> to vector<4x2xf32>
    %cst_22 = arith.constant dense<0.000000e+00> : vector<4xf32>
    %43 = vector.multi_reduction <add>, %42, %cst_22 [1] : vector<4x2xf32> to vector<4xf32>
    %44 = arith.addf %41, %43 : vector<4xf32>
    %c2_23 = arith.constant 2 : index
    %c0_24 = arith.constant 0 : index
    %45 = vector.load %arg6[%c2_23, %c0_24] : memref<3x4xf32, #tpu.memory_space<vmem>>, vector<1x4xf32>
    %46 = vector.shape_cast %45 : vector<1x4xf32> to vector<4xf32>
    %47 = vector.shape_cast %44 : vector<4xf32> to vector<1x4xf32>
    tpu.vector_store %arg6[%c2_23, %c0_24], %47 {strides = array<i32>} : memref<3x4xf32, #tpu.memory_space<vmem>>, vector<1x4xf32>,
    %c0_i32_25 = arith.constant 0 : i32
    %48 = arith.cmpi eq, %arg2, %c0_i32_25 : i32
    %49 = arith.extui %48 : i1 to i32
    %c0_i32_26 = arith.constant 0 : i32
    %50 = arith.cmpi ne, %49, %c0_i32_26 : i32
    scf.if %50 {
      %c0_27 = arith.constant 0 : index
      %c0_28 = arith.constant 0 : index
      %51 = vector.load %arg6[%c0_27, %c0_28] : memref<3x4xf32, #tpu.memory_space<vmem>>, vector<3x4xf32>
      %c0_29 = arith.constant 0 : index
      %c0_30 = arith.constant 0 : index
      %c0_31 = arith.constant 0 : index
      %c0_32 = arith.constant 0 : index
      %52 = vector.load %arg5[%c0_29, %c0_30, %c0_31, %c0_32] : memref<1x1x3x4xf32, #tpu.memory_space<vmem>>, vector<1x1x3x4xf32>
      %53 = vector.shape_cast %52 : vector<1x1x3x4xf32> to vector<3x4xf32>
      %54 = vector.shape_cast %51 : vector<3x4xf32> to vector<1x1x3x4xf32>
      tpu.vector_store %arg5[%c0_29, %c0_30, %c0_31, %c0_32], %54 {strides = array<i32>} : memref<1x1x3x4xf32, #tpu.memory_space<vmem>>, vector<1x1x3x4xf32>,
    } else {
    }
    return
  }
  func.func @transform_0(%arg0: i32, %arg1: i32, %arg2: i32) -> (i32, i32, i32, i32) {
    %c1_i32 = arith.constant 1 : i32
    %0 = arith.muli %arg1, %c1_i32 : i32
    %1 = arith.addi %0, %arg2 : i32
    %c0_i32 = arith.constant 0 : i32
    %c0_i32_0 = arith.constant 0 : i32
    %c0_i32_1 = arith.constant 0 : i32
    return %arg0, %c0_i32, %1, %c0_i32_0 : i32, i32, i32, i32
  }
  func.func @transform_1(%arg0: i32, %arg1: i32, %arg2: i32) -> (i32, i32, i32, i32) {
    %c1_i32 = arith.constant 1 : i32
    %0 = arith.muli %arg1, %c1_i32 : i32
    %1 = arith.addi %0, %arg2 : i32
    %c0_i32 = arith.constant 0 : i32
    %c0_i32_0 = arith.constant 0 : i32
    %c0_i32_1 = arith.constant 0 : i32
    return %arg0, %c0_i32, %1, %c0_i32_0 : i32, i32, i32, i32
  }
  func.func @transform_2(%arg0: i32, %arg1: i32, %arg2: i32) -> (i32, i32, i32, i32) {
    %c0_i32 = arith.constant 0 : i32
    %c0_i32_0 = arith.constant 0 : i32
    %c0_i32_1 = arith.constant 0 : i32
    return %arg0, %arg1, %c0_i32, %c0_i32_0 : i32, i32, i32, i32
  }
}

</mosaic_0001>

<bundles_post_ra>
// kernel: focal_tversky_loss.1
= control target key start
LH: loop header
LB: loop body
LE: loop exit
PB: predicated region body
PF: predicated region fallthrough
CT: control target
= control target key end

     0   :  { %s619_s9 = smov 0   ;;  %s621_s10 = smov 0   ;;  %s699_s0 = inlined_call_operand.vmem [shape: f32[2,4,2,128], index: 0, kind: input, shape index: {}]   ;;  %s700_s1 = inlined_call_operand.vmem [shape: u8[2,1,2,128], index: 1, kind: input, shape index: {}]   ;;  %s701_s2 = inlined_call_operand.vmem [shape: f32[2,1,3,4], index: 2, kind: output, shape index: {}]  }
   0x1   :  { %s623_s11 = smov 0  }
   0x2 LB: > { %s31_s12 = sadd.s32 1, %s597_s10  ;;  %p533_p0 = scmp.ge.s32.totalorder %s601_s11, 1  ;;  %s601_s11 = sphi %s623_s11, %s12_s11   ;;  %s597_s10 = sphi %s621_s10, %s703_s10   ;;  %s593_s9 = sphi %s619_s9, %s702_s9  }
   0x3   : > { %p33_p1 = scmp.ge.s32.totalorder %s31_s12, 2  ;;  %p159_p2 = scmp.lt.s32.totalorder %s601_s11, 3 }
   0x5   : > { %s705_s12 = smov (%p33_p1, %s31_s12), 0  ;;  %p160_p3 = pnand %p533_p0, %p159_p2 }
   0x6   : > { %p195_p4 = scmp.lt.s32.totalorder (!%p160_p3), %s593_s9, 1 }
   0x7   : > { %163 = sbr.rel (%p160_p3) target bundleno = 374 (0x176), region = 28 }
   0xc   : > { %vm223_vm0 = vcmask 26624   ;;  %v603_v0 = vmov 0.0   ;;  %s707_s9 = smov (!%p195_p4, %s593_s9), 1  ;;  %vm232_vm1 = vcmask 1041408   ;;  %v297_v61 = vlaneseq }
   0xd   : > { %224 = vst.msk [vmem:[#allocation2] sm:$0x7] %vm223_vm0, %v603_v0  ;;  %s210_s15 = scalar_lea.vmem %s700_s1, %s707_s9  ;;  %s543_s16 = sshll.u32 %s707_s9, 3  ;;  %vm315_vm6 = vcmask 1041409   ;;  %vm317_vm7 = vcmask 1042434   ;;  %vm319_vm8 = vcmask 1043459  }
   0xe   : > { %v229_v1 = vld [vmem:[%s210_s15] sm:$0x1]  ;;  %s202_s19 = scalar_lea.vmem %s699_s0, %s543_s16  ;;  %vm322_vm9 = vcmask 11264   ;;  %vm333_vm10 = vcmask 24576   ;;  %s536_s20 = sshll.u32 %s707_s9, 2 }
   0xf   : > { %v230_v2 = vunpack.c.0.s8 %v229_v1  ;;  %v225_v3 = vld [vmem:[%s202_s19] sm:$0x3]  ;;  %v226_v4 = vld [vmem:[%s202_s19 + $0x2] sm:$0x3]  ;;  %v227_v5 = vld [vmem:[%s202_s19 + $0x4] sm:$0x3]  ;;  %s218_s23 = scalar_lea.vmem %s701_s2, %s536_s20 }
  0x10   : > { %v228_v7 = vld [vmem:[%s202_s19 + $0x6] sm:$0x3]  ;;  %v233_v8 = vsel %vm232_vm1, %v225_v3, -inf  ;;  %v234_v9 = vsel %vm232_vm1, %v226_v4, -inf  ;;  %v235_v10 = vsel %vm232_vm1, %v227_v5, -inf  ;;  %v300_v1 = vshrl.u32 %v297_v61, 7 }
  0x11   : > { %v231_v6 = vand.u32 255, %v230_v2  ;;  %v236_v11 = vsel %vm232_vm1, %v228_v7, -inf  ;;  %v237_v12 = vmax.f32 %v233_v8, %v234_v9 }
  0x12   : > { %v238_v13 = vmax.f32 %v235_v10, %v236_v11 }
  0x13   : > { %vm264_vm2 = vcmp.eq.s32.totalorder %v231_v6, 0  ;;  %vm265_vm3 = vcmp.eq.s32.totalorder %v231_v6, 1  ;;  %vm266_vm4 = vcmp.eq.s32.totalorder %v231_v6, 2  ;;  %vm267_vm5 = vcmp.eq.s32.totalorder %v231_v6, 3 }
  0x14   : > { %v537_v14 = vsel %vm264_vm2, 1.0, %v603_v0  ;;  %v538_v15 = vsel %vm265_vm3, 1.0, %v603_v0  ;;  %v539_v16 = vsel %vm266_vm4, 1.0, %v603_v0  ;;  %v239_v18 = vmax.f32 %v237_v12, %v238_v13 }
  0x15   : > { %v384_v17 = vsel %vm232_vm1, %v537_v14, 0.0  ;;  %v387_v19 = vsel %vm232_vm1, %v538_v15, 0.0  ;;  %v390_v20 = vsel %vm232_vm1, %v539_v16, 0.0  ;;  %v540_v50 = vsel %vm267_vm5, 1.0, %v603_v0 }
  0x16   : > { %385 = vadd.xlane.f32.xlu0 %v384_v17  ;;  %388 = vadd.xlane.f32.xlu1 %v387_v19  ;;  %v240_v21 = vsub.f32 %v225_v3, %v239_v18  ;;  %v241_v22 = vsub.f32 %v226_v4, %v239_v18  ;;  %v242_v23 = vsub.f32 %v227_v5, %v239_v18  ;;  %v393_v58 = vsel %vm232_vm1, %v540_v50, 0.0 }
  0x17   : > { %v243_v24 = vsub.f32 %v228_v7, %v239_v18  ;;  %v298_v0 = vand.u32 127, %v297_v61 }
  0x18   : > { %v244_v25 = vmul.f32 1.442695, %v240_v21  ;;  %v246_v26 = vmul.f32 1.442695, %v241_v22  ;;  %v248_v27 = vmul.f32 1.442695, %v242_v23 }
  0x19   : > { %v250_v28 = vmul.f32 1.442695, %v243_v24  ;;  %v301_v4 = vsub.s32 %v298_v0, %v300_v1 }
  0x1a   : > { %391 = vadd.xlane.f32.xlu0 %v390_v20  ;;  %569 = vpow2.f32 %v244_v25 }
  0x1b   : > { %571 = vpow2.f32 %v246_v26 }
  0x1c   : > { %573 = vpow2.f32 %v248_v27 }
  0x1d   : > { %575 = vpow2.f32 %v250_v28 }
  0x27   : > { %v570_v29 = vpop.eup %569 }
  0x28   : > { %v572_v30 = vpop.eup %571  ;;  %v252_v31 = vsel %vm232_vm1, %v570_v29, 0.0 }
  0x29   : > { %v574_v32 = vpop.eup %573  ;;  %v253_v33 = vsel %vm232_vm1, %v572_v30, 0.0 }
  0x2a   : > { %v576_v34 = vpop.eup %575  ;;  %v254_v35 = vadd.f32 %v253_v33, %v252_v31  ;;  %v255_v36 = vsel %vm232_vm1, %v574_v32, 0.0 }
  0x2b   : > { %v257_v37 = vsel %vm232_vm1, %v576_v34, 0.0 }
  0x2c   : > { %v256_v38 = vadd.f32 %v255_v36, %v254_v35  ;;  %v276_v35 = vld [vmem:[#allocation2] sm:$0x1] }
  0x2e   : > { %v258_v39 = vadd.f32 %v257_v37, %v256_v38  ;;  %v335_v38 = vld [vmem:[#allocation2 + $0x1] sm:$0x1] }
  0x30   : > { %577 = vrcp.f32 %v258_v39 }
  0x3d   : > { %v578_v40 = vpop.eup %577 }
  0x3e   : > { %v260_v41 = vmul.f32 %v578_v40, %v570_v29  ;;  %v261_v42 = vmul.f32 %v578_v40, %v572_v30  ;;  %v262_v46 = vmul.f32 %v578_v40, %v574_v32  ;;  %v263_v49 = vmul.f32 %v578_v40, %v576_v34 }
  0x40   : > { %v277_v43 = vmul.f32 %v537_v14, %v260_v41  ;;  %v278_v44 = vmul.f32 %v538_v15, %v261_v42  ;;  %v336_v45 = vsel %vm232_vm1, %v260_v41, 0.0  ;;  %v339_v48 = vsel %vm232_vm1, %v261_v42, 0.0  ;;  %v383_v42 = vld [vmem:[#allocation2 + $0x2] sm:$0x1] }
  0x41   : > { %337 = vadd.xlane.f32.xlu1 %v336_v45  ;;  %v279_v52 = vmul.f32 %v539_v16, %v262_v46  ;;  %v342_v53 = vsel %vm232_vm1, %v262_v46, 0.0  ;;  %v280_v54 = vmul.f32 %v540_v50, %v263_v49  ;;  %v345_v57 = vsel %vm232_vm1, %v263_v49, 0.0 }
  0x42   : > { %v281_v47 = vsel %vm232_vm1, %v277_v43, 0.0  ;;  %v284_v51 = vsel %vm232_vm1, %v278_v44, 0.0 }
  0x43   : > { %282 = vadd.xlane.f32.xlu0 %v281_v47  ;;  %v287_v55 = vsel %vm232_vm1, %v279_v52, 0.0  ;;  %v290_v56 = vsel %vm232_vm1, %v280_v54, 0.0 }
  0x45   : > { %340 = vadd.xlane.f32.xlu1 %v339_v48 }
  0x47   : > { %285 = vadd.xlane.f32.xlu0 %v284_v51 }
  0x49   : > { %343 = vadd.xlane.f32.xlu1 %v342_v53 }
  0x4b   : > { %288 = vadd.xlane.f32.xlu0 %v287_v55 }
  0x4d   : > { %291 = vadd.xlane.f32.xlu1 %v290_v56 }
  0x4f   : > { %346 = vadd.xlane.f32.xlu0 %v345_v57 }
  0x51   : > { %394 = vadd.xlane.f32.xlu1 %v393_v58 }
  0x9f   : > { %v386_v59 = vpop.xlane.xlu0 %385  ;;  %v389_v60 = vpop.xlane.xlu1 %388 }
  0xa0   : > { %v403_v10 = vrot.slane %v386_v59, %v301_v4  ;;  %v407_v11 = vrot.slane %v389_v60, %v301_v4 }
  0xa2   : > { %v416_v22 = vsel %vm315_vm6, %v407_v11, %v403_v10 }
  0xa3   : > { %v392_v62 = vpop.xlane.xlu0 %391 }
  0xa4   : > { %v411_v20 = vrot.slane %v392_v62, %v301_v4 }
  0xa6   : > { %v417_v32 = vsel %vm317_vm7, %v411_v20, %v416_v22 }
  0xca   : > { %v338_v63 = vpop.xlane.xlu1 %337 }
  0xcb   : > { %v355_v17 = vrot.slane %v338_v63, %v301_v4 }
  0xcc   : > { %v283_v2 = vpop.xlane.xlu0 %282 }
  0xcd   : > { %v302_v8 = vrot.slane %v283_v2, %v301_v4 }
  0xce   : > { %v341_v3 = vpop.xlane.xlu1 %340 }
  0xcf   : > { %v359_v12 = vrot.slane %v341_v3, %v301_v4 }
  0xd0   : > { %v286_v5 = vpop.xlane.xlu0 %285 }
  0xd1   : > { %v306_v6 = vrot.slane %v286_v5, %v301_v4  ;;  %v368_v23 = vsel %vm315_vm6, %v359_v12, %v355_v17 }
  0xd2   : > { %v344_v7 = vpop.xlane.xlu1 %343 }
  0xd3   : > { %v316_v14 = vsel %vm315_vm6, %v306_v6, %v302_v8  ;;  %v363_v15 = vrot.slane %v344_v7, %v301_v4 }
  0xd4   : > { %v289_v9 = vpop.xlane.xlu0 %288 }
  0xd5   : > { %v310_v13 = vrot.slane %v289_v9, %v301_v4  ;;  %v369_v28 = vsel %vm317_vm7, %v363_v15, %v368_v23 }
  0xd6   : > { %v292_v16 = vpop.xlane.xlu1 %291 }
  0xd7   : > { %v314_v18 = vrot.slane %v292_v16, %v301_v4  ;;  %v318_v19 = vsel %vm317_vm7, %v310_v13, %v316_v14 }
  0xd8   : > { %v347_v21 = vpop.xlane.xlu0 %346 }
  0xd9   : > { %v367_v24 = vrot.slane %v347_v21, %v301_v4  ;;  %v320_v25 = vsel %vm319_vm8, %v314_v18, %v318_v19 }
  0xda   : > { %v395_v26 = vpop.xlane.xlu1 %394  ;;  %v323_v27 = vsel %vm322_vm9, %v320_v25, 0.0 }
  0xdb   : > { %v415_v29 = vrot.slane %v395_v26, %v301_v4  ;;  %324 = vadd.xlane.f32.xlu0 %v323_v27  ;;  %v370_v30 = vsel %vm319_vm8, %v367_v24, %v369_v28 }
  0xdc   : > { %v372_v31 = vsel %vm322_vm9, %v370_v30, 0.0 }
  0xdd   : > { %373 = vadd.xlane.f32.xlu1 %v372_v31  ;;  %v418_v33 = vsel %vm319_vm8, %v415_v29, %v417_v32 }
  0xde   : > { %v420_v34 = vsel %vm322_vm9, %v418_v33, 0.0 }
  0xdf   : > { %421 = vadd.xlane.f32.xlu0 %v420_v34 }
 0x164   : > { %v325_v36 = vpop.xlane.xlu0 %324 }
 0x165   : > { %v330_v37 = vrot.slane %v325_v36, %v301_v4 }
 0x166   : > { %v374_v39 = vpop.xlane.xlu1 %373 }
 0x167   : > { %v332_v40 = vadd.f32 %v330_v37, %v276_v35  ;;  %v379_v41 = vrot.slane %v374_v39, %v301_v4 }
 0x168   : > { %v422_v43 = vpop.xlane.xlu0 %421 }
 0x169   : > { %334 = vst.msk [vmem:[#allocation2] sm:$0x1] %vm333_vm10, %v332_v40  ;;  %v381_v44 = vadd.f32 %v379_v41, %v335_v38  ;;  %v427_v45 = vrot.slane %v422_v43, %v301_v4 }
 0x16b   : > { %382 = vst.msk [vmem:[#allocation2 + $0x1] sm:$0x1] %vm333_vm10, %v381_v44  ;;  %v429_v46 = vadd.f32 %v427_v45, %v383_v42 }
 0x16d   : > { %430 = vst.msk [vmem:[#allocation2 + $0x2] sm:$0x1] %vm333_vm10, %v429_v46 }
 0x174   : > { %v434_v47 = vld [vmem:[#allocation2] sm:$0x7] }
 0x175   : > { %436 = vst.msk [vmem:[%s218_s23] sm:$0x7] %vm223_vm0, %v434_v47 }
 0x176 PF: > { %s12_s11 = sadd.s32 1, %s601_s11   ;;  %s702_s9 = smov %s597_s10 }
 0x177   : > { %p9_p5 = scmp.ge.s32.totalorder %s12_s11, 4   ;;  %s703_s10 = smov %s705_s12 }
 0x179   :  { %11 = sbr.rel (!%p9_p5) target bundleno = 2 (0x2), region = 69 }

</bundles_post_ra>
